<compile_context>
chip_gen: v7x
topology: tpu7x:2x2x1
jax: 0.10.0
libtpu: 0.0.40
codegen_flags: <defaults>
</compile_context>

<pallas_src>
import functools
import math

import jax
import jax.numpy as jnp
from jax.experimental import pallas as pl
from jax.experimental.pallas import tpu as pltpu


def _round_up(x: int, mult: int) -> int:
    return ((x + mult - 1) // mult) * mult


def _tpu_vmem_capacity_bytes() -> int:
    """Physical VMEM per core; fall back to the v7x value (64 MiB) if unknown."""
    try:
        cap = int(getattr(pltpu.get_tpu_info(), "vmem_capacity_bytes"))
        if cap > 0:
            return cap
    except Exception:
        pass
    return 64 * 1024 * 1024


def _mm_kernel(x_ref, w_ref, o_ref, *scratch, compute_dtype):
    """One (tm, tk) @ (tk, tn) MXU tile, accumulated in f32 across grid axis 2.

    If `scratch` is empty the output block itself (f32, VMEM-resident across
    the K axis because its BlockSpec returns the same (i, j) for every k) is
    the accumulator.  Otherwise scratch[0] is the f32 accumulator and is cast
    into o_ref on the last K step.
    """
    k = pl.program_id(2)
    acc_ref = scratch[0] if scratch else o_ref

    x = x_ref[...]
    w = w_ref[...]
    if compute_dtype is not None:
        if x.dtype != compute_dtype:
            x = x.astype(compute_dtype)
        if w.dtype != compute_dtype:
            w = w.astype(compute_dtype)

    prod = jnp.dot(x, w, preferred_element_type=jnp.float32)

    @pl.when(k == 0)
    def _():
        acc_ref[...] = prod          # first K step: plain store, no zero-init pass

    @pl.when(k > 0)
    def _():
        acc_ref[...] += prod

    if scratch:

        @pl.when(k == pl.num_programs(2) - 1)
        def _():
            o_ref[...] = acc_ref[...].astype(o_ref.dtype)


def matmul_pallas(
    x: jax.Array,
    weight: jax.Array,
    *,
    tm: int | None = None,
    tn: int | None = None,
    tk: int | None = None,
    mxu_dtype=None,
    force_pallas: bool = False,
) -> jax.Array:
    """x: (..., in_features), weight: (in_features, out_features) -> (..., out_features).

    mxu_dtype: optional compute dtype for the MXU (e.g. jnp.bfloat16).  Tiles
    are cast in-kernel; accumulation is always f32 and the output dtype is the
    usual x/weight promotion (exact module semantics when mxu_dtype is None).
    """
    in_features, out_features = weight.shape
    assert x.shape[-1] == in_features

    leading = x.shape[:-1]
    m = math.prod(leading) if leading else 1
    n, k = out_features, in_features
    out_dtype = jnp.result_type(x.dtype, weight.dtype)

    # Tiny problems are dominated by fixed pallas_call/DMA overhead.
    if not force_pallas and (m * k * n) < (1 << 20):
        return jnp.matmul(x, weight).astype(out_dtype)

    x2d = x.reshape(m, k)

    # ---- per-generation tile sizes & VMEM budget ---------------------------
    vmem_cap = _tpu_vmem_capacity_bytes()                      # 64 MiB (v7x) / 128 MiB (v5e/v6e)
    vmem_limit = max(32 << 20, min(int(vmem_cap * 0.85), 100 << 20))

    itemsize = jnp.dtype(x.dtype).itemsize
    if tm is None:
        tm = 512
    if tn is None:
        tn = 512
    if tk is None:
        tk = 512 if itemsize >= 4 else 1024                    # bigger K tiles for 16-bit inputs

    # Clamp tiles to the (aligned) problem dims.  Alignment targets:
    #   M: sublane packing multiple of the input dtype (8 f32 / 16 bf16 / 32 i8)
    #   N, K: 128 lanes, rounded to 256 where the dim allows (256x256 MXU on v6e/v7x)
    sub_mult = 8 * max(1, 4 // itemsize)
    tm = min(tm, _round_up(m, sub_mult))
    tn = min(tn, _round_up(n, 256 if n > 128 else 128))
    tk = min(tk, _round_up(k, 256 if k > 128 else 128))

    # K MUST be zero-padded to a tile multiple (OOB K reads would corrupt the
    # sums).  M/N overhang is handled by Pallas' edge-block clipping: no pad,
    # no post-slice, no extra HBM copies.
    k_pad = _round_up(k, tk)
    w2d = weight
    if k_pad != k:
        x2d = jnp.pad(x2d, ((0, 0), (0, k_pad - k)))
        w2d = jnp.pad(w2d, ((0, k_pad - k), (0, 0)))

    grid = (pl.cdiv(m, tm), pl.cdiv(n, tn), k_pad // tk)
    # TODO(synk): on v7x, if cdiv(m,tm)*cdiv(n,tn) == 1 for a large problem,
    # shrink tm/tn so both TensorCores get parallel work.

    acc_in_out = out_dtype == jnp.float32
    scratch_shapes = [] if acc_in_out else [pltpu.VMEM((tm, tn), jnp.float32)]

    kernel = functools.partial(_mm_kernel, compute_dtype=mxu_dtype)

    out2d = pl.pallas_call(
        kernel,
        out_shape=jax.ShapeDtypeStruct((m, n), out_dtype),
        grid_spec=pltpu.PrefetchScalarGridSpec(
            num_scalar_prefetch=0,
            grid=grid,
            in_specs=[
                pl.BlockSpec((tm, tk), lambda i, j, kk: (i, kk)),
                pl.BlockSpec((tk, tn), lambda i, j, kk: (kk, j)),
            ],
            out_specs=pl.BlockSpec((tm, tn), lambda i, j, kk: (i, j)),
            scratch_shapes=scratch_shapes,
        ),
        compiler_params=pltpu.CompilerParams(
            dimension_semantics=("parallel", "parallel", "arbitrary"),
            vmem_limit_bytes=vmem_limit,
        ),
    )(x2d, w2d)

    return out2d.reshape(*leading, out_features)


if __name__ == "__main__":
    in_features, out_features = 128, 64
    batch, seq = 2, 8  # x: (2, 8, 128) -> out: (2, 8, 64)

    key = jax.random.PRNGKey(0)
    kx, kw, kx2 = jax.random.split(key, 3)
    x = jax.random.normal(kx, (batch, seq, in_features), dtype=jnp.float32)
    # Deterministic "learnable" weight (stand-in for torch.randn init).
    weight = jax.random.normal(kw, (in_features, out_features), dtype=jnp.float32)
    ref = jnp.matmul(x, weight)

    # 1) Default path: input dtype on the MXU, f32 accumulate-in-output.
    out = matmul_pallas(x, weight, force_pallas=True)
    jax.block_until_ready(out)
    assert out.shape == (batch, seq, out_features)
    assert out.dtype == ref.dtype
    assert jnp.allclose(out, ref, atol=1e-3, rtol=1e-3)

    # 2) bf16 MXU path: tiles cast to bf16 in-kernel, f32 accumulator, f32 out.
    out_bf16 = matmul_pallas(x, weight, mxu_dtype=jnp.bfloat16, force_pallas=True)
    jax.block_until_ready(out_bf16)
    assert out_bf16.dtype == jnp.float32
    assert jnp.allclose(out_bf16, ref, atol=2e-1, rtol=2e-2)

    # 3) Multi-tile grid with a partial (clipped) M edge block, no M/N padding:
    #    M = 3*80 = 240 rows with tm=128 -> grid (2, 1, 1), second block clipped.
    x_big = jax.random.normal(kx2, (3, 80, in_features), dtype=jnp.float32)
    out_big = matmul_pallas(x_big, weight, tm=128, tn=128, tk=128, force_pallas=True)
    jax.block_until_ready(out_big)
    ref_big = jnp.matmul(x_big, weight)
    assert out_big.shape == (3, 80, out_features)
    assert jnp.allclose(out_big, ref_big, atol=1e-3, rtol=1e-3)

    print("KERNEL_OK")
</pallas_src>

<mosaic_0001>
module attributes {stable_mosaic.version = 11 : i64} {
  func.func @_mm_kernel(%arg0: i32, %arg1: i32, %arg2: i32, %arg3: memref<16x128xf32, #tpu.memory_space<vmem>>, %arg4: memref<128x128xf32, #tpu.memory_space<vmem>>, %arg5: memref<16x128xf32, #tpu.memory_space<vmem>>) attributes {dimension_semantics = [#tpu.dimension_semantics<parallel>, #tpu.dimension_semantics<parallel>, #tpu.dimension_semantics<arbitrary>], iteration_bounds = array<i64: 1, 1, 1>, scalar_prefetch = 0 : i64, scratch_operands = 0 : i64, tpu.core_type = #tpu.core_type<tc>, window_params = [{transform_indices = @transform_0, window_bounds = array<i64: 16, 128>}, {transform_indices = @transform_1, window_bounds = array<i64: 128, 128>}, {transform_indices = @transform_2, window_bounds = array<i64: 16, 128>}]} {
    %c0 = arith.constant 0 : index
    %c0_0 = arith.constant 0 : index
    %0 = vector.load %arg3[%c0, %c0_0] : memref<16x128xf32, #tpu.memory_space<vmem>>, vector<16x128xf32>
    %c0_1 = arith.constant 0 : index
    %c0_2 = arith.constant 0 : index
    %1 = vector.load %arg4[%c0_1, %c0_2] : memref<128x128xf32, #tpu.memory_space<vmem>>, vector<128x128xf32>
    %cst = arith.constant dense<0.000000e+00> : vector<16x128xf32>
    %2 = tpu.matmul %0, %1, %cst {dimension_numbers = #tpu.dot_dimension_numbers<[1], [0], [0], [1], [0, 0, 1, 1], [], []>} : vector<16x128xf32>, vector<128x128xf32>, vector<16x128xf32> -> vector<16x128xf32>
    %c0_i32 = arith.constant 0 : i32
    %3 = arith.cmpi eq, %arg2, %c0_i32 : i32
    %4 = arith.extui %3 : i1 to i32
    %c0_i32_3 = arith.constant 0 : i32
    %5 = arith.cmpi ne, %4, %c0_i32_3 : i32
    scf.if %5 {
      %c0_6 = arith.constant 0 : index
      %c0_7 = arith.constant 0 : index
      %9 = vector.load %arg5[%c0_6, %c0_7] : memref<16x128xf32, #tpu.memory_space<vmem>>, vector<16x128xf32>
      tpu.vector_store %arg5[%c0_6, %c0_7], %2 {strides = array<i32>} : memref<16x128xf32, #tpu.memory_space<vmem>>, vector<16x128xf32>,
    } else {
    }
    %c0_i32_4 = arith.constant 0 : i32
    %6 = arith.cmpi sgt, %arg2, %c0_i32_4 : i32
    %7 = arith.extui %6 : i1 to i32
    %c0_i32_5 = arith.constant 0 : i32
    %8 = arith.cmpi ne, %7, %c0_i32_5 : i32
    scf.if %8 {
      %c0_6 = arith.constant 0 : index
      %c0_7 = arith.constant 0 : index
      %9 = vector.load %arg5[%c0_6, %c0_7] : memref<16x128xf32, #tpu.memory_space<vmem>>, vector<16x128xf32>
      %10 = arith.addf %9, %2 : vector<16x128xf32>
      %c0_8 = arith.constant 0 : index
      %c0_9 = arith.constant 0 : index
      %11 = vector.load %arg5[%c0_8, %c0_9] : memref<16x128xf32, #tpu.memory_space<vmem>>, vector<16x128xf32>
      tpu.vector_store %arg5[%c0_8, %c0_9], %10 {strides = array<i32>} : memref<16x128xf32, #tpu.memory_space<vmem>>, vector<16x128xf32>,
    } else {
    }
    return
  }
  func.func @transform_0(%arg0: i32, %arg1: i32, %arg2: i32) -> (i32, i32) {
    %c0_i32 = arith.constant 0 : i32
    return %arg0, %arg2 : i32, i32
  }
  func.func @transform_1(%arg0: i32, %arg1: i32, %arg2: i32) -> (i32, i32) {
    %c0_i32 = arith.constant 0 : i32
    return %arg2, %arg1 : i32, i32
  }
  func.func @transform_2(%arg0: i32, %arg1: i32, %arg2: i32) -> (i32, i32) {
    %c0_i32 = arith.constant 0 : i32
    return %arg0, %arg1 : i32, i32
  }
}

</mosaic_0001>

<bundles_post_ra>
// kernel: tpu_custom_call.1
= control target key start
LH: loop header
LB: loop body
LE: loop exit
PB: predicated region body
PF: predicated region fallthrough
CT: control target
= control target key end

     0   :  { %s333_s0 = inlined_call_operand.vmem [shape: f32[16,128], index: 0, kind: input, shape index: {}]   ;;  %s334_s1 = inlined_call_operand.vmem [shape: f32[128,64], index: 1, kind: input, shape index: {}]   ;;  %s335_s2 = inlined_call_operand.hbm [shape: f32[16,64], index: 2, kind: output, shape index: {}]  }
   0x1   :  { %v14_v0 = vld [vmem:[%s334_s1] sm:$0xff]  ;;  %v15_v1 = vld [vmem:[%s334_s1 + $0x8] sm:$0xff]  ;;  %v16_v2 = vld [vmem:[%s334_s1 + $0x10] sm:$0xff] }
   0x2   :  { %v190_v3 = vpack.c.bf16 %v15_v1, %v14_v0  ;;  %v17_v4 = vld [vmem:[%s334_s1 + $0x18] sm:$0xff]  ;;  %v18_v6 = vld [vmem:[%s334_s1 + $0x20] sm:$0xff]  ;;  %v19_v7 = vld [vmem:[%s334_s1 + $0x28] sm:$0xff] }
   0x3   :  { %v194_v5 = vpack.c.bf16 %v17_v4, %v16_v2  ;;  %v198_v8 = vpack.c.bf16 %v19_v7, %v18_v6  ;;  %v12_v9 = vld [vmem:[%s333_s0] sm:$0xff]  ;;  %v20_v10 = vld [vmem:[%s334_s1 + $0x30] sm:$0xff]  ;;  %v21_v11 = vld [vmem:[%s334_s1 + $0x38] sm:$0xff] }
   0x4   :  { %191 = vmatprep.subr.bf16.mxu0 %v190_v3  ;;  %187 = vmatprep.mubr.f32.mxu0 %v12_v9 }
   0x5   :  { %193 = vmatpush3.bf16.msra.mxu0 %v190_v3 }
   0x6   :  { %195 = vmatprep.subr.bf16.mxu0 %v194_v5 }
   0x7   :  { %7 = vsyncpa [#allocation3], 0  ;;  %v202_v12 = vpack.c.bf16 %v21_v11, %v20_v10  ;;  %v22_v13 = vld [vmem:[%s334_s1 + $0x40] sm:$0xff]  ;;  %v23_v14 = vld [vmem:[%s334_s1 + $0x48] sm:$0xff]  ;;  %s249_s17 = smov [#allocation2]  }
   0x8   :  { %v206_v15 = vpack.c.bf16 %v23_v14, %v22_v13  ;;  %v24_v16 = vld [vmem:[%s334_s1 + $0x50] sm:$0xff]  ;;  %v25_v17 = vld [vmem:[%s334_s1 + $0x58] sm:$0xff]  ;;  %v26_v19 = vld [vmem:[%s334_s1 + $0x60] sm:$0xff]  ;;  %s126_s18 = sshll.u32 %s249_s17, 4  ;;  %s127_s18 = int_to_ptr.vmem [resolvable:$true] %s126_s18 }
   0x9   :  { %197 = vmatpush3.bf16.msra.mxu0 %v194_v5  ;;  %v210_v18 = vpack.c.bf16 %v25_v17, %v24_v16  ;;  %v27_v20 = vld [vmem:[%s334_s1 + $0x68] sm:$0xff]  ;;  %v28_v22 = vld [vmem:[%s334_s1 + $0x70] sm:$0xff]  ;;  %v29_v23 = vld [vmem:[%s334_s1 + $0x78] sm:$0xff]  ;;  %s225_s19 = scalar_lea.vmem %s127_s18, 256  ;;  %p230_p1 = scmp.lt.s32.totalorder %s127_s18, %s127_s18 }
   0xa   :  { %199 = vmatprep.subr.bf16.mxu0 %v198_v8  ;;  %v214_v21 = vpack.c.bf16 %v27_v20, %v26_v19  ;;  %v218_v24 = vpack.c.bf16 %v29_v23, %v28_v22  ;;  %v13_v25 = vld [vmem:[%s333_s0 + $0x8] sm:$0xff]  ;;  %p226_p0 = scmp.ne.s32.totalorder %s127_s18, %s225_s19  ;;  %p231_p2 = scmp.lt.s32.totalorder %s225_s19, %s225_s19 }
   0xc   :  { %p232_p3 = por %p231_p2, %p230_p1 }
   0xd   :  { %201 = vmatpush3.bf16.msra.mxu0 %v198_v8 }
   0xe   :  { %203 = vmatprep.subr.bf16.mxu0 %v202_v12  ;;  %p233_p4 = pnand %p232_p3, %p226_p0 }
  0x11   :  { %205 = vmatpush3.bf16.msra.mxu0 %v202_v12 }
  0x12   :  { %207 = vmatprep.subr.bf16.mxu0 %v206_v15 }
  0x15   :  { %209 = vmatpush3.bf16.msra.mxu0 %v206_v15 }
  0x16   :  { %211 = vmatprep.subr.bf16.mxu0 %v210_v18 }
  0x19   :  { %213 = vmatpush3.bf16.msra.mxu0 %v210_v18 }
  0x1a   :  { %215 = vmatprep.subr.bf16.mxu0 %v214_v21 }
  0x1d   :  { %217 = vmatpush3.bf16.msra.mxu0 %v214_v21 }
  0x1e   :  { %219 = vmatprep.subr.bf16.mxu0 %v218_v24 }
  0x21   :  { %221 = vmatpush3.bf16.msra.mxu0 %v218_v24 }
  0x24   :  { %188 = vmatmul.mubr.f32.vlgmr.msra.gmra.mrb[0].mxu0 %v13_v25 }
  0xf7   :  { %v189_v26 = vpop.f32.mrb[0].mxu0 }
  0xf8   :  { %110 = vst [vmem:[#allocation2 + $0x8] sm:$0xff] %v189_v26  ;;  %v96_v27 = vpop.f32.mrb[1].mxu0 }
  0xf9   :  { %109 = vst [vmem:[#allocation2] sm:$0xff] %v96_v27 }
  0xfa   :  { %236 = shalt.err (!%p233_p4)
}
  0xfb   :  { %s237_s21 = scalar_lea.hbm %s335_s2, 256 }
  0xfc   :  { %p238_p5 = scmp.ne.s32.totalorder %s335_s2, %s237_s21  ;;  %p241_p6 = scmp.lt.u32.totalorder %s237_s21, %s335_s2 }
  0xfe   :  { %p243_p7 = pnand %p241_p6, %p238_p5 }
 0x100   :  { %246 = shalt.err (!%p243_p7)
}
 0x101   :  { %s250_s25 = smov 128   ;;  %s251_s26 = smov 8  }
 0x102   :  { %132 = dma.vmem_to_hbm [thread:$0]  %s127_s18, 256, %s335_s2, [#allocation3], %s250_s25, %s250_s25, %s251_s26  }
 0x103   :  { %247 = dma.done.wait [#allocation3], 256  }
 0x104   :  { %248 = vsyncadd [#allocation3], 4294967040 }
 0x105   :  { %136 = vsyncpa [#allocation3], 1 }

</bundles_post_ra>
